<compile_context>
chip_gen: v7x
topology: tpu7x:2x2x1
jax: 0.10.0
libtpu: 0.0.40
codegen_flags: <defaults>
</compile_context>

<pallas_src>
import jax
import jax.numpy as jnp
from jax.experimental import pallas as pl
from jax.experimental.pallas import tpu as pltpu


def mm_plus_eye_scalar_kernel(x_ref, o_ref):
    # x_ref: SMEM f32[4] holding [[a, b], [c, d]] row-major.
    # o_ref: SMEM f32[4] receiving (x @ x + eye(2)) row-major.
    a = x_ref[0]
    b = x_ref[1]
    c = x_ref[2]
    d = x_ref[3]
    # x @ x = [[a*a + b*c, b*(a+d)],
    #          [c*(a+d),   d*d + b*c]] ; +1 folded into the two diagonals.
    t = a + d
    bc = b * c
    o_ref[0] = a * a + bc + 1.0
    o_ref[1] = b * t
    o_ref[2] = c * t
    o_ref[3] = d * d + bc + 1.0


@jax.jit
def _mm_plus_eye_2x2(x):
    # Flatten to 4 SMEM scalars; all glue ops fuse into this one executable.
    x_flat = x.astype(jnp.float32).reshape(-1)
    out_flat = pl.pallas_call(
        mm_plus_eye_scalar_kernel,
        out_shape=jax.ShapeDtypeStruct((4,), jnp.float32),
        in_specs=[pl.BlockSpec(memory_space=pltpu.SMEM)],
        out_specs=pl.BlockSpec(memory_space=pltpu.SMEM),
    )(x_flat)
    return out_flat.reshape(2, 2)


def model_forward(x):
    """Equivalent of Model.forward: returns (v2.size(0), v2)."""
    n = x.shape[0]
    assert x.shape == (n, n)
    # torch.eye(2) broadcast constrains the valid input to 2x2.
    assert n == 2, "v1 + torch.eye(2) only broadcasts when inp is 2x2"
    v2 = _mm_plus_eye_2x2(x)
    # Model returns v2.size(0): static shape -> plain Python int, no device sync.
    return v2.shape[0], v2


if __name__ == "__main__":
    key = jax.random.PRNGKey(0)
    # Small input consistent with the module's forward: 2x2 float32.
    x = jax.random.normal(key, (2, 2), dtype=jnp.float32)

    size0, v2 = model_forward(x)
    v2 = jax.block_until_ready(v2)

    # Cross-check against a pure-JAX reference.
    ref = x @ x + jnp.eye(2, dtype=jnp.float32)
    assert size0 == 2
    assert jnp.allclose(v2, ref, atol=1e-5, rtol=1e-5)

    print("KERNEL_OK")
</pallas_src>

<mosaic_0001>
module attributes {stable_mosaic.version = 11 : i64} {
  func.func @mm_plus_eye_scalar_kernel(%arg0: memref<4xf32, #tpu.memory_space<smem>>, %arg1: memref<4xf32, #tpu.memory_space<smem>>) attributes {dimension_semantics = [], scalar_prefetch = 0 : i64, scratch_operands = 0 : i64, tpu.core_type = #tpu.core_type<tc>} {
    %c0 = arith.constant 0 : index
    %0 = memref.load %arg0[%c0] : memref<4xf32, #tpu.memory_space<smem>>
    %c1 = arith.constant 1 : index
    %1 = memref.load %arg0[%c1] : memref<4xf32, #tpu.memory_space<smem>>
    %c2 = arith.constant 2 : index
    %2 = memref.load %arg0[%c2] : memref<4xf32, #tpu.memory_space<smem>>
    %c3 = arith.constant 3 : index
    %3 = memref.load %arg0[%c3] : memref<4xf32, #tpu.memory_space<smem>>
    %4 = arith.addf %0, %3 : f32
    %5 = arith.mulf %1, %2 : f32
    %6 = arith.mulf %0, %0 : f32
    %7 = arith.addf %6, %5 : f32
    %cst = arith.constant 1.000000e+00 : f32
    %8 = arith.addf %7, %cst : f32
    %c0_0 = arith.constant 0 : index
    %9 = memref.load %arg1[%c0_0] : memref<4xf32, #tpu.memory_space<smem>>
    memref.store %8, %arg1[%c0_0] : memref<4xf32, #tpu.memory_space<smem>>
    %10 = arith.mulf %1, %4 : f32
    %c1_1 = arith.constant 1 : index
    %11 = memref.load %arg1[%c1_1] : memref<4xf32, #tpu.memory_space<smem>>
    memref.store %10, %arg1[%c1_1] : memref<4xf32, #tpu.memory_space<smem>>
    %12 = arith.mulf %2, %4 : f32
    %c2_2 = arith.constant 2 : index
    %13 = memref.load %arg1[%c2_2] : memref<4xf32, #tpu.memory_space<smem>>
    memref.store %12, %arg1[%c2_2] : memref<4xf32, #tpu.memory_space<smem>>
    %14 = arith.mulf %3, %3 : f32
    %15 = arith.addf %14, %5 : f32
    %cst_3 = arith.constant 1.000000e+00 : f32
    %16 = arith.addf %15, %cst_3 : f32
    %c3_4 = arith.constant 3 : index
    %17 = memref.load %arg1[%c3_4] : memref<4xf32, #tpu.memory_space<smem>>
    memref.store %16, %arg1[%c3_4] : memref<4xf32, #tpu.memory_space<smem>>
    return
  }
}

</mosaic_0001>

<bundles_post_ra>
// kernel: _mm_plus_eye_2x2.1
= control target key start
LH: loop header
LB: loop body
LE: loop exit
PB: predicated region body
PF: predicated region fallthrough
CT: control target
= control target key end

     0   :  { %6 = vsyncpa [#allocation3], 0  ;;  %s111_s0 = inlined_call_operand.vmem [shape: f32[4], index: 0, kind: input, shape index: {}]   ;;  %s112_s1 = inlined_call_operand.vmem [shape: f32[4], index: 1, kind: output, shape index: {}]  }
   0x1   :  { %7 = vsyncpa [#allocation4], 0  ;;  %s14_s8 = sshll.u32 %s111_s0, 4  ;;  %s15_s8 = int_to_ptr.vmem [resolvable:$true] %s14_s8 }
   0x2   :  { %s65_s9 = scalar_lea.vmem %s15_s8, 16  ;;  %p70_p1 = scmp.lt.s32.totalorder %s15_s8, %s15_s8 }
   0x3   :  { %p66_p0 = scmp.ne.s32.totalorder %s15_s8, %s65_s9  ;;  %p71_p2 = scmp.lt.s32.totalorder %s65_s9, %s65_s9 }
   0x5   :  { %p72_p3 = por %p71_p2, %p70_p1 }
   0x7   :  { %p73_p4 = pnand %p72_p3, %p66_p0 }
   0x9   :  { %76 = shalt.err (!%p73_p4)
}
   0xa   :  { %s93_s10 = smov [#allocation2]  }
   0xb   :  { %17 = dma.vmem_to_smem %s15_s8, 16, %s93_s10, [#allocation3]  }
   0xc   :  { %89 = dma.done.wait [#allocation3], 16  }
   0xd   :  { %90 = vsyncadd [#allocation3], 4294967280 }
   0xe   :  { %21 = sfence }
   0xf   :  { %s22_s11 = sld [smem:[#allocation2]]  ;;  %s60_s12 = sld [smem:[#allocation2 + $0x1]] }
  0x10   :  { %s61_s13 = sld [smem:[#allocation2 + $0x2]]  ;;  %s62_s14 = sld [smem:[#allocation2 + $0x3]] }
  0x11   :  { %s50_s25 = sshll.u32 %s112_s1, 4  ;;  %s51_s25 = int_to_ptr.vmem [resolvable:$true] %s50_s25 }
  0x12   :  { %s77_s27 = scalar_lea.vmem %s51_s25, 16  ;;  %p82_p6 = scmp.lt.s32.totalorder %s51_s25, %s51_s25 }
  0x13   :  { %p78_p5 = scmp.ne.s32.totalorder %s51_s25, %s77_s27  ;;  %p83_p7 = scmp.lt.s32.totalorder %s77_s27, %s77_s27 }
  0x15   :  { %s28_s15 = smul.f32 %s22_s11, %s22_s11  ;;  %p84_p8 = por %p83_p7, %p82_p6 }
  0x16   :  { %s26_s16 = sadd.f32 %s62_s14, %s22_s11  ;;  %s27_s0 = smul.f32 %s61_s13, %s60_s12 }
  0x17   :  { %s39_s17 = smul.f32 %s62_s14, %s62_s14  ;;  %p85_p9 = pnand %p84_p8, %p78_p5 }
  0x18   :  { %s29_s18 = sadd.f32 %s28_s15, %s27_s0  ;;  %s33_s19 = smul.f32 %s60_s12, %s26_s16 }
  0x19   :  { %s36_s20 = smul.f32 %s61_s13, %s26_s16  ;;  %s40_s21 = sadd.f32 %s39_s17, %s27_s0 }
  0x1a   :  { %s30_s22 = sadd.f32 1.0, %s29_s18 }
  0x1b   :  { %35 = sst [smem:[#allocation5 + $0x1]] %s33_s19 }
  0x1c   :  { %32 = sst [smem:[#allocation5]] %s30_s22 }
  0x1d   :  { %38 = sst [smem:[#allocation5 + $0x2]] %s36_s20 }
  0x1e   :  { %s41_s26 = sadd.f32 1.0, %s40_s21 }
  0x20   :  { %43 = sst [smem:[#allocation5 + $0x3]] %s41_s26 }
  0x21   :  { %88 = shalt.err (!%p85_p9)
}
  0x22   :  { %s94_s28 = smov [#allocation5]  }
  0x23   :  { %53 = dma.smem_to_vmem %s94_s28, 16, %s51_s25, [#allocation4]  }
  0x24   :  { %91 = dma.done.wait [#allocation4], 16  }
  0x25   :  { %92 = vsyncadd [#allocation4], 4294967280 }
  0x26   :  { %57 = sfence }
  0x27   :  { %58 = vsyncpa [#allocation3], 1 }
  0x28   :  { %59 = vsyncpa [#allocation4], 1 }

</bundles_post_ra>
